<compile_context>
chip_gen: v7x
topology: tpu7x:2x2x1
jax: 0.10.0
libtpu: 0.0.40
codegen_flags: <defaults>
</compile_context>

<pallas_src>
import functools

import jax
import jax.numpy as jnp
from jax.experimental import pallas as pl
from jax.experimental.pallas import tpu as pltpu

_TARGET_BLOCK_BYTES = 4 * 1024 * 1024   # ~4 MiB per array per block
_MIN_SPLIT_ROWS = 1024                  # force >= 2 blocks above this (2-TC balance)
_VMEM_LIMIT_BYTES = 32 * 1024 * 1024    # 3 arrays x 2 buffers x 4 MiB = 24 MiB used


def _round_up(x: int, m: int) -> int:
    return ((x + m - 1) // m) * m


def _choose_lane(n: int):
    """Largest of {512,256,128} dividing n (no pad), else 128 with padding."""
    for lane in (512, 256, 128):
        if n % lane == 0:
            return lane, False
    return 128, True


def _scale_residual_kernel(x_ref, y_ref, o_ref, *, scale: float):
    # x/y/o: (tm, lane) tiles in VMEM. `scale` is a compile-time Python float.
    if scale == 1.0:
        # Training "kept" branch: plain residual add in the native dtype.
        o_ref[...] = x_ref[...] + y_ref[...]
    else:
        # Eval re-calibration: f32 math (accurate for bf16 inputs), cast on store.
        o_ref[...] = (
            jnp.float32(scale) * y_ref[...].astype(jnp.float32)
            + x_ref[...].astype(jnp.float32)
        ).astype(o_ref.dtype)


def _pallas_scale_residual(scale: float, x, y):
    """Elementwise out = scale * y + x for identically shaped x, y."""
    orig_shape = x.shape
    orig_dtype = x.dtype
    n = x.size
    itemsize = jnp.dtype(orig_dtype).itemsize

    # ---- lane-dense 2-D slab, avoiding pad/slice copies whenever possible ----
    lane, needs_pad = _choose_lane(n)
    xf = x.reshape(-1)
    yf = y.reshape(-1)
    if needs_pad:
        n_pad = _round_up(n, lane)
        xf = jnp.pad(xf, (0, n_pad - n))
        yf = jnp.pad(yf, (0, n_pad - n))
    else:
        n_pad = n
    rows = n_pad // lane
    x2 = xf.reshape(rows, lane)
    y2 = yf.reshape(rows, lane)

    # ---- dtype-aware row tiling (~4 MiB per array per block) ----
    row_tile = max(8, _TARGET_BLOCK_BYTES // (lane * itemsize))  # 2048 f32 / 4096 bf16 @512

    if rows <= row_tile and rows < _MIN_SPLIT_ROWS:
        # Single block == full array (exempt from the (8,128) divisibility rule).
        tm = rows
        grid = (1,)
    else:
        # Split into an even number of near-equal blocks so both TensorCores on
        # v7x get balanced work (no full-block + tiny-remainder imbalance).
        nblocks = max(2, pl.cdiv(rows, row_tile))
        if nblocks % 2:
            nblocks += 1
        tm = _round_up(pl.cdiv(rows, nblocks), 8)
        grid = (pl.cdiv(rows, tm),)

    kernel = functools.partial(_scale_residual_kernel, scale=float(scale))

    out2 = pl.pallas_call(
        kernel,
        out_shape=jax.ShapeDtypeStruct((rows, lane), orig_dtype),
        grid=grid,
        in_specs=[
            pl.BlockSpec((tm, lane), lambda i: (i, 0)),   # layer_input tile
            pl.BlockSpec((tm, lane), lambda i: (i, 0)),   # layer_output tile
        ],
        out_specs=pl.BlockSpec((tm, lane), lambda i: (i, 0)),
        compiler_params=pltpu.CompilerParams(
            dimension_semantics=("parallel",),
            vmem_limit_bytes=_VMEM_LIMIT_BYTES,
        ),
        cost_estimate=pl.CostEstimate(
            flops=2 * n,
            transcendentals=0,
            bytes_accessed=3 * n * itemsize,
        ),
    )(x2, y2)

    out = out2.reshape(-1)
    if needs_pad:
        out = out[:n]
    return out.reshape(orig_shape)


def residual_with_layer_dropout(
    layer_input,
    layer_output,
    layer_index=None,
    total_layers=None,
    *,
    undecayed_dropout_prob: float = 0.5,
    training: bool = False,
    rng=None,
):
    """JAX/Pallas equivalent of ResidualWithLayerDropout.forward."""
    if not (0.0 <= undecayed_dropout_prob <= 1.0):
        raise ValueError(
            f"undecayed dropout probability has to be between 0 and 1, "
            f"but got {undecayed_dropout_prob}"
        )
    if layer_index is not None and total_layers is not None:
        dropout_prob = 1.0 * undecayed_dropout_prob * layer_index / total_layers
    else:
        dropout_prob = 1.0 * undecayed_dropout_prob

    if training:
        if rng is None:
            raise ValueError("training=True requires an rng key")
        # One draw for the whole mini-batch, exactly like `torch.rand(1) < p`.
        u = jax.random.uniform(rng, (), dtype=jnp.float32)
        keep = u >= jnp.float32(dropout_prob)
        # Dropped branch skips the kernel entirely (no HBM traffic for y).
        return jax.lax.cond(
            keep,
            lambda: _pallas_scale_residual(1.0, layer_input, layer_output),
            lambda: layer_input,
        )
    else:
        return _pallas_scale_residual(1.0 - dropout_prob, layer_input, layer_output)


if __name__ == "__main__":
    key = jax.random.PRNGKey(0)
    k_in, k_out, k_drop, k_in2, k_out2 = jax.random.split(key, 5)

    # ---------------- small NCHW, f32 (single full-array block, lane=512) ------
    B, C, H, W = 2, 4, 16, 16
    layer_input = jax.random.normal(k_in, (B, C, H, W), dtype=jnp.float32)
    layer_output = jax.random.normal(k_out, (B, C, H, W), dtype=jnp.float32)

    # Eval mode (deterministic re-calibration): p = 0.5 * 2 / 4 = 0.25.
    out_eval = residual_with_layer_dropout(
        layer_input, layer_output,
        layer_index=2, total_layers=4,
        undecayed_dropout_prob=0.5, training=False,
    )
    out_eval = jax.block_until_ready(out_eval)
    ref_eval = (1.0 - 0.25) * layer_output + layer_input
    assert jnp.allclose(out_eval, ref_eval, atol=1e-6), "eval-mode mismatch"

    # Training mode: result must equal either x (dropped) or x + y (kept).
    out_train = residual_with_layer_dropout(
        layer_input, layer_output,
        layer_index=2, total_layers=4,
        undecayed_dropout_prob=0.5, training=True, rng=k_drop,
    )
    out_train = jax.block_until_ready(out_train)
    ok_drop = jnp.allclose(out_train, layer_input, atol=1e-6)
    ok_keep = jnp.allclose(out_train, layer_input + layer_output, atol=1e-6)
    assert bool(ok_drop) or bool(ok_keep), "train-mode mismatch"

    # ---------------- bf16 path (dtype cast on the store) ----------------------
    xi_bf = layer_input.astype(jnp.bfloat16)
    yo_bf = layer_output.astype(jnp.bfloat16)
    out_bf = residual_with_layer_dropout(
        xi_bf, yo_bf,
        layer_index=2, total_layers=4,
        undecayed_dropout_prob=0.5, training=False,
    )
    out_bf = jax.block_until_ready(out_bf)
    assert out_bf.dtype == jnp.bfloat16, "bf16 output dtype mismatch"
    ref_bf = ((1.0 - 0.25) * yo_bf.astype(jnp.float32)
              + xi_bf.astype(jnp.float32)).astype(jnp.bfloat16)
    assert jnp.allclose(out_bf.astype(jnp.float32),
                        ref_bf.astype(jnp.float32), atol=2e-2), "bf16 eval mismatch"

    # ---------------- mid-size: forced 2-block balanced split (1200 rows) ------
    shp = (2, 16, 64, 300)  # 614400 elems -> 1200 rows of 512 -> 2 blocks of 600
    xi2 = jax.random.normal(k_in2, shp, dtype=jnp.float32)
    yo2 = jax.random.normal(k_out2, shp, dtype=jnp.float32)
    out2 = residual_with_layer_dropout(
        xi2, yo2, undecayed_dropout_prob=0.3, training=False,
    )
    out2 = jax.block_until_ready(out2)
    ref2 = (1.0 - 0.3) * yo2 + xi2
    assert jnp.allclose(out2, ref2, atol=1e-5), "balanced-split eval mismatch"

    # ---------------- larger: rows > row_tile, multi-step tiled grid -----------
    shp3 = (16, 8, 128, 128)  # 2,097,152 elems -> 4096 rows -> 2 blocks of 2048
    xi3 = jax.random.normal(k_in2, shp3, dtype=jnp.float32)
    yo3 = jax.random.normal(k_out2, shp3, dtype=jnp.float32)
    out3 = residual_with_layer_dropout(
        xi3, yo3, undecayed_dropout_prob=0.2, training=False,
    )
    out3 = jax.block_until_ready(out3)
    ref3 = (1.0 - 0.2) * yo3 + xi3
    assert jnp.allclose(out3, ref3, atol=1e-5), "tiled-grid eval mismatch"

    # ---------------- adaptive lane width (768 elems -> lane=256, no padding) --
    xi4 = jax.random.normal(k_in, (8, 96), dtype=jnp.float32)
    yo4 = jax.random.normal(k_out, (8, 96), dtype=jnp.float32)
    out4 = residual_with_layer_dropout(
        xi4, yo4, undecayed_dropout_prob=0.5, training=False,
    )
    out4 = jax.block_until_ready(out4)
    ref4 = 0.5 * yo4 + xi4
    assert jnp.allclose(out4, ref4, atol=1e-6), "adaptive-lane eval mismatch"

    # ---------------- odd size: exercises the (rare) pad fallback --------------
    xi5 = jax.random.normal(k_in, (3, 5, 7), dtype=jnp.float32)
    yo5 = jax.random.normal(k_out, (3, 5, 7), dtype=jnp.float32)
    out5 = residual_with_layer_dropout(
        xi5, yo5, undecayed_dropout_prob=0.5, training=False,
    )
    out5 = jax.block_until_ready(out5)
    ref5 = 0.5 * yo5 + xi5
    assert jnp.allclose(out5, ref5, atol=1e-6), "padded-path eval mismatch"

    print("KERNEL_OK")
</pallas_src>

<mosaic_0001>
module attributes {stable_mosaic.version = 11 : i64} {
  func.func @_scale_residual_kernel(%arg0: i32, %arg1: memref<4x512xf32, #tpu.memory_space<vmem>>, %arg2: memref<4x512xf32, #tpu.memory_space<vmem>>, %arg3: memref<4x512xf32, #tpu.memory_space<vmem>>) attributes {dimension_semantics = [#tpu.dimension_semantics<parallel>], iteration_bounds = array<i64: 1>, scalar_prefetch = 0 : i64, scratch_operands = 0 : i64, tpu.core_type = #tpu.core_type<tc>, window_params = [{transform_indices = @transform_0, window_bounds = array<i64: 4, 512>}, {transform_indices = @transform_1, window_bounds = array<i64: 4, 512>}, {transform_indices = @transform_2, window_bounds = array<i64: 4, 512>}]} {
    %c0 = arith.constant 0 : index
    %c0_0 = arith.constant 0 : index
    %0 = vector.load %arg2[%c0, %c0_0] : memref<4x512xf32, #tpu.memory_space<vmem>>, vector<4x512xf32>
    %cst = arith.constant 7.500000e-01 : f32
    %1 = vector.broadcast %cst : f32 to vector<4x512xf32>
    %2 = arith.mulf %1, %0 : vector<4x512xf32>
    %c0_1 = arith.constant 0 : index
    %c0_2 = arith.constant 0 : index
    %3 = vector.load %arg1[%c0_1, %c0_2] : memref<4x512xf32, #tpu.memory_space<vmem>>, vector<4x512xf32>
    %4 = arith.addf %2, %3 : vector<4x512xf32>
    %c0_3 = arith.constant 0 : index
    %c0_4 = arith.constant 0 : index
    %5 = vector.load %arg3[%c0_3, %c0_4] : memref<4x512xf32, #tpu.memory_space<vmem>>, vector<4x512xf32>
    tpu.vector_store %arg3[%c0_3, %c0_4], %4 {strides = array<i32>} : memref<4x512xf32, #tpu.memory_space<vmem>>, vector<4x512xf32>,
    return
  }
  func.func @transform_0(%arg0: i32) -> (i32, i32) {
    %c0_i32 = arith.constant 0 : i32
    %c0_i32_0 = arith.constant 0 : i32
    return %arg0, %c0_i32 : i32, i32
  }
  func.func @transform_1(%arg0: i32) -> (i32, i32) {
    %c0_i32 = arith.constant 0 : i32
    %c0_i32_0 = arith.constant 0 : i32
    return %arg0, %c0_i32 : i32, i32
  }
  func.func @transform_2(%arg0: i32) -> (i32, i32) {
    %c0_i32 = arith.constant 0 : i32
    %c0_i32_0 = arith.constant 0 : i32
    return %arg0, %c0_i32 : i32, i32
  }
}

</mosaic_0001>

<bundles_post_ra>
// kernel: tpu_custom_call.1
= control target key start
LH: loop header
LB: loop body
LE: loop exit
PB: predicated region body
PF: predicated region fallthrough
CT: control target
= control target key end

     0   :  { %7 = vsyncpa [#allocation3], 0  ;;  %s191_s0 = inlined_call_operand.hbm [shape: f32[4,512], index: 0, kind: input, shape index: {}]   ;;  %s192_s1 = inlined_call_operand.hbm [shape: f32[4,512], index: 1, kind: input, shape index: {}]   ;;  %s193_s2 = inlined_call_operand.hbm [shape: f32[4,512], index: 2, kind: output, shape index: {}]  }
   0x1   :  { %8 = vsyncpa [#allocation6], 0 }
   0x2   :  { %9 = vsyncpa [#allocation4], 0  ;;  %s137_s9 = smov [#allocation2]   ;;  %s138_s11 = smov [#allocation5]  }
   0x3   :  { %s16_s10 = sshll.u32 %s137_s9, 4  ;;  %s26_s12 = sshll.u32 %s138_s11, 4  ;;  %s17_s10 = int_to_ptr.vmem [resolvable:$true] %s16_s10  ;;  %s27_s12 = int_to_ptr.vmem [resolvable:$true] %s26_s12 }
   0x4   :  { %s65_s15 = scalar_lea.hbm %s191_s0, 256 }
   0x5   :  { %p66_p0 = scmp.ne.s32.totalorder %s191_s0, %s65_s15  ;;  %p69_p1 = scmp.lt.u32.totalorder %s65_s15, %s191_s0 }
   0x7   :  { %p71_p2 = pnand %p69_p1, %p66_p0 }
   0x9   :  { %74 = shalt.err (!%p71_p2)
}
   0xa   :  { %s75_s20 = scalar_lea.vmem %s17_s10, 256  ;;  %p80_p4 = scmp.lt.s32.totalorder %s17_s10, %s17_s10 }
   0xb   :  { %p76_p3 = scmp.ne.s32.totalorder %s17_s10, %s75_s20  ;;  %p81_p5 = scmp.lt.s32.totalorder %s75_s20, %s75_s20 }
   0xd   :  { %p82_p6 = por %p81_p5, %p80_p4 }
   0xf   :  { %p83_p7 = pnand %p82_p6, %p76_p3 }
  0x11   :  { %86 = shalt.err (!%p83_p7)
}
  0x12   :  { %19 = dma.hbm_to_vmem [thread:$0]  %s191_s0, 256, %s17_s10, [#allocation3]  }
  0x13   :  { %s87_s25 = scalar_lea.hbm %s192_s1, 256 }
  0x14   :  { %p88_p8 = scmp.ne.s32.totalorder %s192_s1, %s87_s25  ;;  %p91_p9 = scmp.lt.u32.totalorder %s87_s25, %s192_s1 }
  0x16   :  { %p93_p10 = pnand %p91_p9, %p88_p8 }
  0x18   :  { %96 = shalt.err (!%p93_p10)
}
  0x19   :  { %s97_s30 = scalar_lea.vmem %s27_s12, 256  ;;  %p102_p12 = scmp.lt.s32.totalorder %s27_s12, %s27_s12 }
  0x1a   :  { %p98_p11 = scmp.ne.s32.totalorder %s27_s12, %s97_s30  ;;  %p103_p13 = scmp.lt.s32.totalorder %s97_s30, %s97_s30 }
  0x1c   :  { %p104_p0 = por %p103_p13, %p102_p12 }
  0x1e   :  { %p105_p1 = pnand %p104_p0, %p98_p11 }
  0x20   :  { %108 = shalt.err (!%p105_p1)
}
  0x21   :  { %29 = dma.hbm_to_vmem [thread:$0]  %s192_s1, 256, %s27_s12, [#allocation6]  }
  0x22   :  { %131 = dma.done.wait [#allocation3], 256  }
  0x23   :  { %132 = vsyncadd [#allocation3], 4294967040 }
  0x24   :  { %133 = dma.done.wait [#allocation6], 256  }
  0x25   :  { %134 = vsyncadd [#allocation6], 4294967040  ;;  %v36_v0 = vld [vmem:[#allocation5] sm:$0xff]  ;;  %v40_v1 = vld [vmem:[#allocation2] sm:$0xff]  ;;  %s139_s4 = smov [#allocation7]  }
  0x26   :  { %v37_v2 = vld [vmem:[#allocation5 + $0x8] sm:$0xff]  ;;  %s52_s5 = sshll.u32 %s139_s4, 4  ;;  %v38_v3 = vmul.f32 0.75, %v36_v0  ;;  %v41_v5 = vld [vmem:[#allocation2 + $0x8] sm:$0xff]  ;;  %s53_s5 = int_to_ptr.vmem [resolvable:$true] %s52_s5 }
  0x27   :  { %v39_v4 = vmul.f32 0.75, %v37_v2  ;;  %s109_s6 = scalar_lea.vmem %s53_s5, 256  ;;  %p114_p3 = scmp.lt.s32.totalorder %s53_s5, %s53_s5 }
  0x28   :  { %v42_v6 = vadd.f32 %v40_v1, %v38_v3  ;;  %p110_p2 = scmp.ne.s32.totalorder %s53_s5, %s109_s6  ;;  %p115_p4 = scmp.lt.s32.totalorder %s109_s6, %s109_s6 }
  0x29   :  { %v43_v7 = vadd.f32 %v41_v5, %v39_v4 }
  0x2a   :  { %44 = vst [vmem:[#allocation7] sm:$0xff] %v42_v6  ;;  %p116_p5 = por %p115_p4, %p114_p3 }
  0x2b   :  { %45 = vst [vmem:[#allocation7 + $0x8] sm:$0xff] %v43_v7 }
  0x2c   :  { %p117_p6 = pnand %p116_p5, %p110_p2 }
  0x2e   :  { %120 = shalt.err (!%p117_p6)
}
  0x2f   :  { %s121_s8 = scalar_lea.hbm %s193_s2, 256 }
  0x30   :  { %p122_p7 = scmp.ne.s32.totalorder %s193_s2, %s121_s8  ;;  %p125_p8 = scmp.lt.u32.totalorder %s121_s8, %s193_s2 }
  0x32   :  { %p127_p9 = pnand %p125_p8, %p122_p7 }
  0x34   :  { %130 = shalt.err (!%p127_p9)
}
  0x35   :  { %55 = dma.vmem_to_hbm [thread:$0]  %s53_s5, 256, %s193_s2, [#allocation4]  }
  0x36   :  { %135 = dma.done.wait [#allocation4], 256  }
  0x37   :  { %136 = vsyncadd [#allocation4], 4294967040 }
  0x38   :  { %59 = vsyncpa [#allocation3], 1 }
  0x39   :  { %60 = vsyncpa [#allocation6], 1 }
  0x3a   :  { %61 = vsyncpa [#allocation4], 1 }

</bundles_post_ra>
